<compile_context>
chip_gen: v7x
topology: tpu7x:2x2x1
jax: 0.10.0
libtpu: 0.0.40
codegen_flags: <defaults>
</compile_context>

<pallas_src>
import jax
import jax.numpy as jnp
from jax.experimental import pallas as pl
from jax.experimental.pallas import tpu as pltpu


def _round_up(x: int, m: int) -> int:
    return -(-x // m) * m


def value_net_kernel(x_ref, w1_ref, b1_ref, w2_ref, b2_ref, w3_ref, b3_ref, o_ref):
    # Batch tile arrives row-major (TB, S); one cheap XLU transpose puts the batch
    # on the lane axis so every later op -- and crucially the output store -- is
    # lane-dense.
    xT = x_ref[...].T                                              # (S, TB)

    # Hidden layers: f32 MXU matmuls + bias/ReLU on the VPU.
    h1 = jnp.dot(w1_ref[...], xT, preferred_element_type=jnp.float32)
    h1 = jnp.maximum(h1 + b1_ref[...], 0.0)                        # (H, TB)
    h2 = jnp.dot(w2_ref[...], h1, preferred_element_type=jnp.float32)
    h2 = jnp.maximum(h2 + b2_ref[...], 0.0)                        # (H, TB)

    # Value head: (1, H) @ (H, TB) -> (1, TB), already lane-dense for the store.
    v = jnp.dot(w3_ref[...], h2, preferred_element_type=jnp.float32)
    o_ref[...] = (v + b3_ref[0, 0]).astype(o_ref.dtype)


def value_network_forward(state, w1, b1, w2, b2, w3, b3, *, block_b=512):
    """Fused ValueNetwork forward.

    state: (B, state_dim) f32
    w1: (hidden, state_dim), b1: (hidden,)   -- PyTorch nn.Linear (out, in) layout
    w2: (hidden, hidden),    b2: (hidden,)
    w3: (1, hidden),         b3: (1,)
    Returns (B, 1) f32.
    """
    B, state_dim = state.shape
    hidden = w1.shape[0]

    # --- batch tile sizing ---------------------------------------------------
    # Big tiles amortize the ~0.35us/grid-step overhead and make the x DMA large;
    # but keep >= 2 "parallel" grid steps when the batch allows it so both v7x
    # TensorCores get work, and never tile past the batch by more than padding.
    block_b = _round_up(max(block_b, 128), 128)
    block_b = min(block_b, _round_up(pl.cdiv(B, 2), 128))
    block_b = min(block_b, _round_up(B, 8))
    num_tiles = pl.cdiv(B, block_b)
    padded_b = num_tiles * block_b

    # Biases as columns / scalar for the batch-on-lanes orientation (tiny reshapes).
    b1c = b1.reshape(hidden, 1)
    b2c = b2.reshape(hidden, 1)
    b3s = b3.reshape(1, 1)

    const = lambda i: (0, 0)  # weights/biases: same block every step -> VMEM-resident

    out = pl.pallas_call(
        value_net_kernel,
        out_shape=jax.ShapeDtypeStruct((1, padded_b), jnp.float32),
        grid=(num_tiles,),
        in_specs=[
            pl.BlockSpec((block_b, state_dim), lambda i: (i, 0)),   # x batch tile (last block may be partial)
            pl.BlockSpec((hidden, state_dim), const),               # W1 (out, in)
            pl.BlockSpec((hidden, 1), const),                       # b1 column
            pl.BlockSpec((hidden, hidden), const),                  # W2 (out, in)
            pl.BlockSpec((hidden, 1), const),                       # b2 column
            pl.BlockSpec((1, hidden), const),                       # W3 row (out=1, in)
            pl.BlockSpec(memory_space=pltpu.MemorySpace.SMEM),      # b3 scalar
        ],
        out_specs=pl.BlockSpec((1, block_b), lambda i: (0, i)),     # lane-dense output slab
        compiler_params=pltpu.CompilerParams(
            dimension_semantics=("parallel",)),
    )(state, w1, b1c, w2, b2c, w3, b3s)

    # (1, padded_b) -> (B, 1); lanes beyond B carry padded-tile garbage and are dropped.
    return out[0, :B].reshape(B, 1)


def init_params(key, state_dim, hidden_dim):
    """Deterministic init matching nn.Linear's U(-1/sqrt(fan_in), 1/sqrt(fan_in)),
    with PyTorch-native (out_features, in_features) weight layouts."""
    def uniform(k, shape, fan_in):
        bound = 1.0 / (fan_in ** 0.5)
        return jax.random.uniform(k, shape, jnp.float32, -bound, bound)

    k = jax.random.split(key, 6)
    w1 = uniform(k[0], (hidden_dim, state_dim), state_dim)
    b1 = uniform(k[1], (hidden_dim,), state_dim)
    w2 = uniform(k[2], (hidden_dim, hidden_dim), hidden_dim)
    b2 = uniform(k[3], (hidden_dim,), hidden_dim)
    w3 = uniform(k[4], (1, hidden_dim), hidden_dim)
    b3 = uniform(k[5], (1,), hidden_dim)
    return w1, b1, w2, b2, w3, b3


def reference_forward(state, w1, b1, w2, b2, w3, b3):
    h1 = jnp.maximum(state @ w1.T + b1, 0.0)
    h2 = jnp.maximum(h1 @ w2.T + b2, 0.0)
    return h2 @ w3.T + b3


if __name__ == "__main__":
    batch = 600          # not a multiple of the batch tile -> exercises the partial last block
    state_dim = 16
    hidden_dim = 128     # nn.Module default

    key = jax.random.PRNGKey(0)
    k_state, k_params = jax.random.split(key)

    state = jax.random.normal(k_state, (batch, state_dim), dtype=jnp.float32)
    params = init_params(k_params, state_dim, hidden_dim)

    out = jax.block_until_ready(value_network_forward(state, *params))
    ref = reference_forward(state, *params)

    assert out.shape == (batch, 1), out.shape
    err = float(jnp.max(jnp.abs(out - ref)))
    assert jnp.allclose(out, ref, atol=2e-2, rtol=2e-2), err

    print("KERNEL_OK")
</pallas_src>

<mosaic_0001>
module attributes {stable_mosaic.version = 11 : i64} {
  func.func @value_net_kernel(%arg0: i32, %arg1: memref<384x16xf32, #tpu.memory_space<vmem>>, %arg2: memref<128x16xf32, #tpu.memory_space<vmem>>, %arg3: memref<128x1xf32, #tpu.memory_space<vmem>>, %arg4: memref<128x128xf32, #tpu.memory_space<vmem>>, %arg5: memref<128x1xf32, #tpu.memory_space<vmem>>, %arg6: memref<1x128xf32, #tpu.memory_space<vmem>>, %arg7: memref<1x1xf32, #tpu.memory_space<smem>>, %arg8: memref<1x384xf32, #tpu.memory_space<vmem>>) attributes {dimension_semantics = [#tpu.dimension_semantics<parallel>], iteration_bounds = array<i64: 2>, scalar_prefetch = 0 : i64, scratch_operands = 0 : i64, tpu.core_type = #tpu.core_type<tc>, window_params = [{transform_indices = @transform_0, window_bounds = array<i64: 384, 16>}, {pipeline_mode = #tpu.pipeline_mode<synchronous>, transform_indices = @transform_1, window_bounds = array<i64: 128, 16>}, {pipeline_mode = #tpu.pipeline_mode<synchronous>, transform_indices = @transform_2, window_bounds = array<i64: 128, 1>}, {pipeline_mode = #tpu.pipeline_mode<synchronous>, transform_indices = @transform_3, window_bounds = array<i64: 128, 128>}, {pipeline_mode = #tpu.pipeline_mode<synchronous>, transform_indices = @transform_4, window_bounds = array<i64: 128, 1>}, {pipeline_mode = #tpu.pipeline_mode<synchronous>, transform_indices = @transform_5, window_bounds = array<i64: 1, 128>}, {transform_indices = @transform_6, window_bounds = array<i64: 1, 1>}, {transform_indices = @transform_7, window_bounds = array<i64: 1, 384>}]} {
    %c0 = arith.constant 0 : index
    %c0_0 = arith.constant 0 : index
    %0 = vector.load %arg1[%c0, %c0_0] : memref<384x16xf32, #tpu.memory_space<vmem>>, vector<384x16xf32>
    %1 = tpu.transpose %0, [1, 0] : vector<384x16xf32> -> vector<16x384xf32>
    %c0_1 = arith.constant 0 : index
    %c0_2 = arith.constant 0 : index
    %2 = vector.load %arg2[%c0_1, %c0_2] : memref<128x16xf32, #tpu.memory_space<vmem>>, vector<128x16xf32>
    %cst = arith.constant dense<0.000000e+00> : vector<128x384xf32>
    %3 = tpu.matmul %2, %1, %cst {dimension_numbers = #tpu.dot_dimension_numbers<[1], [0], [0], [1], [0, 0, 1, 1], [], []>} : vector<128x16xf32>, vector<16x384xf32>, vector<128x384xf32> -> vector<128x384xf32>
    %c0_3 = arith.constant 0 : index
    %c0_4 = arith.constant 0 : index
    %4 = vector.load %arg3[%c0_3, %c0_4] : memref<128x1xf32, #tpu.memory_space<vmem>>, vector<128x1xf32>
    %5 = vector.broadcast %4 : vector<128x1xf32> to vector<128x384xf32>
    %6 = arith.addf %3, %5 : vector<128x384xf32>
    %cst_5 = arith.constant 0.000000e+00 : f32
    %7 = vector.broadcast %cst_5 : f32 to vector<128x384xf32>
    %8 = arith.maximumf %6, %7 : vector<128x384xf32>
    %c0_6 = arith.constant 0 : index
    %c0_7 = arith.constant 0 : index
    %9 = vector.load %arg4[%c0_6, %c0_7] : memref<128x128xf32, #tpu.memory_space<vmem>>, vector<128x128xf32>
    %cst_8 = arith.constant dense<0.000000e+00> : vector<128x384xf32>
    %10 = tpu.matmul %9, %8, %cst_8 {dimension_numbers = #tpu.dot_dimension_numbers<[1], [0], [0], [1], [0, 0, 1, 1], [], []>} : vector<128x128xf32>, vector<128x384xf32>, vector<128x384xf32> -> vector<128x384xf32>
    %c0_9 = arith.constant 0 : index
    %c0_10 = arith.constant 0 : index
    %11 = vector.load %arg5[%c0_9, %c0_10] : memref<128x1xf32, #tpu.memory_space<vmem>>, vector<128x1xf32>
    %12 = vector.broadcast %11 : vector<128x1xf32> to vector<128x384xf32>
    %13 = arith.addf %10, %12 : vector<128x384xf32>
    %cst_11 = arith.constant 0.000000e+00 : f32
    %14 = vector.broadcast %cst_11 : f32 to vector<128x384xf32>
    %15 = arith.maximumf %13, %14 : vector<128x384xf32>
    %c0_12 = arith.constant 0 : index
    %c0_13 = arith.constant 0 : index
    %16 = vector.load %arg6[%c0_12, %c0_13] : memref<1x128xf32, #tpu.memory_space<vmem>>, vector<1x128xf32>
    %cst_14 = arith.constant dense<0.000000e+00> : vector<1x384xf32>
    %17 = tpu.matmul %16, %15, %cst_14 {dimension_numbers = #tpu.dot_dimension_numbers<[1], [0], [0], [1], [0, 0, 1, 1], [], []>} : vector<1x128xf32>, vector<128x384xf32>, vector<1x384xf32> -> vector<1x384xf32>
    %c0_15 = arith.constant 0 : index
    %c0_16 = arith.constant 0 : index
    %18 = memref.load %arg7[%c0_15, %c0_16] : memref<1x1xf32, #tpu.memory_space<smem>>
    %19 = vector.broadcast %18 : f32 to vector<1x384xf32>
    %20 = arith.addf %17, %19 : vector<1x384xf32>
    %c0_17 = arith.constant 0 : index
    %c0_18 = arith.constant 0 : index
    %21 = vector.load %arg8[%c0_17, %c0_18] : memref<1x384xf32, #tpu.memory_space<vmem>>, vector<1x384xf32>
    tpu.vector_store %arg8[%c0_17, %c0_18], %20 {strides = array<i32>} : memref<1x384xf32, #tpu.memory_space<vmem>>, vector<1x384xf32>,
    return
  }
  func.func @transform_0(%arg0: i32) -> (i32, i32) {
    %c0_i32 = arith.constant 0 : i32
    %c0_i32_0 = arith.constant 0 : i32
    return %arg0, %c0_i32 : i32, i32
  }
  func.func @transform_1(%arg0: i32) -> (i32, i32) {
    %c0_i32 = arith.constant 0 : i32
    %c0_i32_0 = arith.constant 0 : i32
    %c0_i32_1 = arith.constant 0 : i32
    return %c0_i32, %c0_i32_0 : i32, i32
  }
  func.func @transform_2(%arg0: i32) -> (i32, i32) {
    %c0_i32 = arith.constant 0 : i32
    %c0_i32_0 = arith.constant 0 : i32
    %c0_i32_1 = arith.constant 0 : i32
    return %c0_i32, %c0_i32_0 : i32, i32
  }
  func.func @transform_3(%arg0: i32) -> (i32, i32) {
    %c0_i32 = arith.constant 0 : i32
    %c0_i32_0 = arith.constant 0 : i32
    %c0_i32_1 = arith.constant 0 : i32
    return %c0_i32, %c0_i32_0 : i32, i32
  }
  func.func @transform_4(%arg0: i32) -> (i32, i32) {
    %c0_i32 = arith.constant 0 : i32
    %c0_i32_0 = arith.constant 0 : i32
    %c0_i32_1 = arith.constant 0 : i32
    return %c0_i32, %c0_i32_0 : i32, i32
  }
  func.func @transform_5(%arg0: i32) -> (i32, i32) {
    %c0_i32 = arith.constant 0 : i32
    %c0_i32_0 = arith.constant 0 : i32
    %c0_i32_1 = arith.constant 0 : i32
    return %c0_i32, %c0_i32_0 : i32, i32
  }
  func.func @transform_6(%arg0: i32) -> (i32, i32) {
    %c0_i32 = arith.constant 0 : i32
    %c0_i32_0 = arith.constant 0 : i32
    %c0_i32_1 = arith.constant 0 : i32
    return %c0_i32, %c0_i32_0 : i32, i32
  }
  func.func @transform_7(%arg0: i32) -> (i32, i32) {
    %c0_i32 = arith.constant 0 : i32
    %c0_i32_0 = arith.constant 0 : i32
    return %c0_i32, %arg0 : i32, i32
  }
}

</mosaic_0001>

<bundles_post_ra>
// kernel: tpu_custom_call.1
= control target key start
LH: loop header
LB: loop body
LE: loop exit
PB: predicated region body
PF: predicated region fallthrough
CT: control target
= control target key end

     0   :  { %s3154_s0 = inlined_call_operand.vmem [shape: f32[600,16], index: 0, kind: input, shape index: {}]   ;;  %s3155_s1 = inlined_call_operand.vmem [shape: f32[128,16], index: 1, kind: input, shape index: {}]   ;;  %s3156_s2 = inlined_call_operand.vmem [shape: f32[128,1], index: 2, kind: input, shape index: {}]   ;;  %s3157_s3 = inlined_call_operand.vmem [shape: f32[128,128], index: 3, kind: input, shape index: {}]   ;;  %s3158_s4 = inlined_call_operand.vmem [shape: f32[128,1], index: 4, kind: input, shape index: {}]   ;;  %s3159_s5 = inlined_call_operand.vmem [shape: f32[1,128], index: 5, kind: input, shape index: {}]   ;;  %s3160_s6 = inlined_call_operand.<no memory space> [shape: f32[1,1], index: 6, kind: input, shape index: {}]   ;;  %s3161_s7 = inlined_call_operand.hbm [shape: f32[1,768], index: 7, kind: output, shape index: {}]  }
   0x1   :  { %12 = sst [smem:[#allocation2]] %s3160_s6 }
   0x2   :  { %13 = vsyncpa [#allocation4], 0 }
   0x3   :  { %15 = vsyncpa [#allocation4 + $0x1], 0  ;;  %s2481_s26 = smov 0   ;;  %s2483_s27 = smov 0  }
   0x4   :  { %s2485_s28 = smov 0   ;;  %s2487_s29 = smov 0  }
   0x5 LB: > { %s1723_s6 = sadd.s32 4294967295, %s2430_s29   ;;  %s1724_s30 = sadd.s32 4294967294, %s2430_s29   ;;  %s2430_s29 = sphi %s2487_s29, %s3169_s29   ;;  %s2426_s28 = sphi %s2485_s28, %s3168_s28   ;;  %s2422_s27 = sphi %s2483_s27, %s3167_s27   ;;  %s2418_s26 = sphi %s2481_s26, %s3166_s26  }
   0x6   : > { %s2504_s8 = sadd.s32 1, %s2430_s29   ;;  %s180_s9 = sadd.s32 1, %s2426_s28 }
   0x7   : > { %s177_s10 = ssub.s32 %s2430_s29, %s2504_s8  ;;  %p190_p0 = scmp.ne.s32.totalorder %s2426_s28, %s2422_s27 }
   0x8   : > { %p178_p1 = scmp.eq.s32.totalorder %s177_s10, 0  ;;  %p191_p2 = scmp.eq.s32.totalorder %s1723_s6, 1 }
   0x9   : > { %p196_p3 = scmp.ne.s32.totalorder %s2422_s27, %s2418_s26  ;;  %p197_p4 = scmp.eq.s32.totalorder %s1724_s30, 1 }
   0xa   : > { %s2514_s11 = scalar_select %p178_p1, %s2426_s28, %s180_s9  }
   0xb   : > { %p2516_p5 = por %p191_p2, %p190_p0  ;;  %p2520_p6 = por %p197_p4, %p196_p3 }
   0xc   : > { %p1727_p7 = scmp.ge.s32.totalorder %s2430_s29, 1  ;;  %p250_p8 = scmp.lt.s32.totalorder %s2430_s29, 3 }
   0xe   : > { %p251_p9 = pnand %p1727_p7, %p250_p8 }
   0xf   : > { %s2526_s14 = smul.u32 (!%p251_p9), 48, %s1723_s6  ;;  %vm461_vm0 = vcmask (!%p251_p9), 130048   ;;  %v2531_v0 = vld [vmem:[%s3155_s1] sm:$0xff] (!%p251_p9)  ;;  %v2432_v1 = vmov (!%p251_p9), 0   ;;  %v367_v3 = vld [vmem:[%s3156_s2 + $0x10] sm:$0xff] (!%p251_p9)  ;;  %v366_v5 = vld [vmem:[%s3156_s2 + $0x8] sm:$0xff] (!%p251_p9) }
  0x10   : > { %254 = sbr.rel (%p251_p9) target bundleno = 898 (0x382), region = 48  ;;  %1845 = vmatprep.mubr.msk.f32.mxu0 (!%p251_p9), %vm461_vm0, %v2531_v0  ;;  %1990 = vmatprep.mubr.msk.f32.mxu1 (!%p251_p9), %vm461_vm0, %v2531_v0  ;;  %v365_v2 = vld [vmem:[%s3156_s2] sm:$0xff] (!%p251_p9)  ;;  %vm2552_vm1 = vmpackc.low (!%p251_p9), %vm461_vm0, %vm461_vm0  ;;  %v368_v6 = vld [vmem:[%s3156_s2 + $0x18] sm:$0xff] (!%p251_p9)  ;;  %vm2435_vm2 = vmmov (!%p251_p9), 0   ;;  %s1475_s18 = sld [smem:[#allocation2]] (!%p251_p9) }
  0x11   : > { %p291_p10 = scmp.lt.s32.totalorder (!%p251_p9), %s2526_s14, 74  ;;  %2366 = vset.pattern.permute.xlu0 (!%p251_p9), %v2432_v1  ;;  %2367 = vset.pattern.permute.xlu1 (!%p251_p9), %v2432_v1  ;;  %v369_v21 = vld [vmem:[%s3156_s2 + $0x20] sm:$0xff] (!%p251_p9)  ;;  %v370_v23 = vld [vmem:[%s3156_s2 + $0x28] sm:$0xff] (!%p251_p9)  ;;  %v371_v40 = vld [vmem:[%s3156_s2 + $0x30] sm:$0xff] (!%p251_p9)  ;;  %s283_s19 = sand.u32 (!%p251_p9), 1, %s2422_s27  }
  0x12   : > { %383 = vperm.xlu0 (!%p251_p9), %2366, %v365_v2   ;;  %393 = vperm.xlu1 (!%p251_p9), %2367, %v367_v3   ;;  %v372_v41 = vld [vmem:[%s3156_s2 + $0x38] sm:$0xff] (!%p251_p9)  ;;  %v373_v44 = vld [vmem:[%s3156_s2 + $0x40] sm:$0xff] (!%p251_p9)  ;;  %v374_v45 = vld [vmem:[%s3156_s2 + $0x48] sm:$0xff] (!%p251_p9)  ;;  %s3112_s24 = scalar_lea.hbm (!%p251_p9), %s3161_s7, %s2526_s14  ;;  %s1651_s6 = scalar_lea.sflag (!%p251_p9), [#allocation4], %s283_s19 }
  0x13   : > { %v375_v52 = vld [vmem:[%s3156_s2 + $0x50] sm:$0xff] (!%p251_p9)  ;;  %v376_v54 = vld [vmem:[%s3156_s2 + $0x58] sm:$0xff] (!%p251_p9)  ;;  %v377_v57 = vld [vmem:[%s3156_s2 + $0x60] sm:$0xff] (!%p251_p9)  ;;  %s2437_s9 = smov (!%p251_p9), [#allocation3]  }
  0x14   : > { %v378_v58 = vld [vmem:[%s3156_s2 + $0x68] sm:$0xff] (!%p251_p9)  ;;  %v379_v2 = vld [vmem:[%s3156_s2 + $0x70] sm:$0xff] (!%p251_p9)  ;;  %v352_v4 = vld [vmem:[%s3155_s1 + $0x18] sm:$0xff] (!%p251_p9)  ;;  %s2372_s10 = sshll.u32 (!%p251_p9), %s2437_s9, 4  ;;  %s2373_s10 = int_to_ptr.vmem [resolvable:$false] %s2372_s10 }
  0x15   : > { %s2374_s15 = scalar_lea.vmem (!%p251_p9), %s2373_s10, 96 }
  0x16   : > { %388 = vperm.xlu0 (!%p251_p9), %2366, %v366_v5   ;;  %398 = vperm.xlu1 (!%p251_p9), %2367, %v368_v6   ;;  %v380_v5 = vld [vmem:[%s3156_s2 + $0x78] sm:$0xff] (!%p251_p9) }
  0x17   : > { %s292_s17 = scalar_select %p291_p10, %s2526_s14, 74 }
  0x19   : > { %s1728_s20 = sshll.u32 %s292_s17, 3 }
  0x1a   : > { %s2548_s25 = scalar_lea.vmem %s3154_s0, %s1728_s20  ;;  %403 = vperm.xlu0 %2366, %v369_v21   ;;  %408 = vperm.xlu1 %2367, %v370_v23   ;;  %v1028_v21 = vld [vmem:[%s3158_s4 + $0x20] sm:$0xff]  ;;  %s2321_s20 = smul.u32 3, %s283_s19 }
  0x1b   : > { %v317_v7 = vld [vmem:[%s2548_s25 + $0x80] sm:$0xff]  ;;  %v318_v8 = vld [vmem:[%s2548_s25 + $0x88] sm:$0xff]  ;;  %v319_v16 = vld [vmem:[%s2548_s25 + $0x90] sm:$0xff] }
  0x1c   : > { %v333_v9 = vld [vmem:[%s2548_s25 + $0x100] sm:$0xff]  ;;  %v2105_v10 = vpack.c.bf16 %v318_v8, %v317_v7  ;;  %v334_v11 = vld [vmem:[%s2548_s25 + $0x108] sm:$0xff]  ;;  %v320_v17 = vld [vmem:[%s2548_s25 + $0x98] sm:$0xff]  ;;  %s285_s21 = scalar_lea.vmem [#allocation3], %s2321_s20 }
  0x1d   : > { %v301_v12 = vld [vmem:[%s2548_s25] sm:$0xff]  ;;  %v302_v13 = vld [vmem:[%s2548_s25 + $0x8] sm:$0xff]  ;;  %v2153_v14 = vpack.c.bf16 %v334_v11, %v333_v9  ;;  %v335_v18 = vld [vmem:[%s2548_s25 + $0x110] sm:$0xff]  ;;  %v2111_v19 = vpack.c.bf16 %v320_v17, %v319_v16  ;;  %s1665_s22 = sshll.u32 %s285_s21, 4  ;;  %s3114_s22 = int_to_ptr.vmem [resolvable:$true] %s1665_s22 }
  0x1e   : > { %v2108_v15 = vpack.c.bf16 %v302_v13, %v301_v12  ;;  %2107 = vmatprep.subr.msk.bf16.mxu0 %vm2552_vm1, %v2105_v10  ;;  %v336_v20 = vld [vmem:[%s2548_s25 + $0x118] sm:$0xff]  ;;  %v303_v24 = vld [vmem:[%s2548_s25 + $0x10] sm:$0xff]  ;;  %v321_v26 = vld [vmem:[%s2548_s25 + $0xa0] sm:$0xff]  ;;  %413 = vperm.xlu0 %2366, %v371_v40   ;;  %s2368_s30 = scalar_lea.vmem %s3114_s22, 48  ;;  %p2375_p0 = scmp.lt.s32.totalorder %s3114_s22, %s2373_s10 }
  0x1f   : > { %2155 = vmatprep.subr.msk.bf16.mxu1 %vm2552_vm1, %v2153_v14  ;;  %v2159_v22 = vpack.c.bf16 %v336_v20, %v335_v18  ;;  %v304_v25 = vld [vmem:[%s2548_s25 + $0x18] sm:$0xff]  ;;  %v322_v27 = vld [vmem:[%s2548_s25 + $0xa8] sm:$0xff]  ;;  %v337_v28 = vld [vmem:[%s2548_s25 + $0x120] sm:$0xff]  ;;  %418 = vperm.xlu1 %2367, %v372_v41   ;;  %p2369_p11 = scmp.ne.s32.totalorder %s3114_s22, %s2368_s30  ;;  %p2376_p1 = scmp.lt.s32.totalorder %s2374_s15, %s2368_s30 }
  0x20   : > { %2110 = vmatpush3.bf16.xpose.msk.msra.mxu0 %vm2552_vm1, %v2108_v15  ;;  %2158 = vmatpush3.bf16.xpose.msk.msra.mxu1 %vm2552_vm1, %v2153_v14  ;;  %v338_v29 = vld [vmem:[%s2548_s25 + $0x128] sm:$0xff]  ;;  %v2114_v30 = vpack.c.bf16 %v304_v25, %v303_v24  ;;  %v2117_v31 = vpack.c.bf16 %v322_v27, %v321_v26  ;;  %v305_v33 = vld [vmem:[%s2548_s25 + $0x20] sm:$0xff]  ;;  %v323_v35 = vld [vmem:[%s2548_s25 + $0xb0] sm:$0xff] }
  0x21   : > { %2113 = vmatprep.subr.msk.bf16.mxu0 %vm2552_vm1, %v2111_v19  ;;  %2161 = vmatprep.subr.msk.bf16.mxu1 %vm2552_vm1, %v2159_v22  ;;  %v2165_v32 = vpack.c.bf16 %v338_v29, %v337_v28  ;;  %v306_v34 = vld [vmem:[%s2548_s25 + $0x28] sm:$0xff]  ;;  %v324_v36 = vld [vmem:[%s2548_s25 + $0xb8] sm:$0xff]  ;;  %v339_v37 = vld [vmem:[%s2548_s25 + $0x130] sm:$0xff]  ;;  %p2370_p12 = pnand %p2369_p11, %p2516_p5  ;;  %p2377_p2 = por %p2376_p1, %p2375_p0 }
  0x22   : > { %v340_v38 = vld [vmem:[%s2548_s25 + $0x138] sm:$0xff]  ;;  %v2120_v39 = vpack.c.bf16 %v306_v34, %v305_v33  ;;  %v2123_v42 = vpack.c.bf16 %v324_v36, %v323_v35  ;;  %v307_v46 = vld [vmem:[%s2548_s25 + $0x30] sm:$0xff]  ;;  %v325_v48 = vld [vmem:[%s2548_s25 + $0xc0] sm:$0xff]  ;;  %423 = vperm.xlu0 %2366, %v373_v44  }
  0x23   : > { %v2171_v43 = vpack.c.bf16 %v340_v38, %v339_v37  ;;  %v308_v47 = vld [vmem:[%s2548_s25 + $0x38] sm:$0xff]  ;;  %v326_v49 = vld [vmem:[%s2548_s25 + $0xc8] sm:$0xff]  ;;  %v341_v50 = vld [vmem:[%s2548_s25 + $0x140] sm:$0xff]  ;;  %428 = vperm.xlu1 %2367, %v374_v45   ;;  %p2371_p13 = pneg %p2370_p12 }
  0x24   : > { %v342_v51 = vld [vmem:[%s2548_s25 + $0x148] sm:$0xff]  ;;  %v2126_v53 = vpack.c.bf16 %v308_v47, %v307_v46  ;;  %v2129_v55 = vpack.c.bf16 %v326_v49, %v325_v48  ;;  %v309_v59 = vld [vmem:[%s2548_s25 + $0x40] sm:$0xff]  ;;  %v327_v61 = vld [vmem:[%s2548_s25 + $0xd0] sm:$0xff] }
  0x25   : > { %v2177_v56 = vpack.c.bf16 %v342_v51, %v341_v50  ;;  %v310_v60 = vld [vmem:[%s2548_s25 + $0x48] sm:$0xff]  ;;  %v328_v62 = vld [vmem:[%s2548_s25 + $0xd8] sm:$0xff]  ;;  %v343_v63 = vld [vmem:[%s2548_s25 + $0x150] sm:$0xff]  ;;  %p2378_p3 = pnand %p2377_p2, %p2371_p13 }
  0x26   : > { %433 = vperm.xlu0 %2366, %v375_v52   ;;  %v344_v1 = vld [vmem:[%s2548_s25 + $0x158] sm:$0xff]  ;;  %v2132_v3 = vpack.c.bf16 %v310_v60, %v309_v59  ;;  %v2135_v6 = vpack.c.bf16 %v328_v62, %v327_v61  ;;  %v1024_v8 = vld [vmem:[%s3158_s4] sm:$0xff]  ;;  %v1025_v9 = vld [vmem:[%s3158_s4 + $0x8] sm:$0xff]  ;;  %v2433_v59 = vmov 0.0  }
  0x27   : > { %438 = vperm.xlu1 %2367, %v376_v54   ;;  %v2183_v7 = vpack.c.bf16 %v344_v1, %v343_v63  ;;  %v311_v10 = vld [vmem:[%s2548_s25 + $0x50] sm:$0xff]  ;;  %v312_v11 = vld [vmem:[%s2548_s25 + $0x58] sm:$0xff]  ;;  %v329_v12 = vld [vmem:[%s2548_s25 + $0xe0] sm:$0xff] }
  0x28   : > { %2116 = vmatpush3.bf16.xpose.msk.msra.mxu0 %vm2552_vm1, %v2114_v30  ;;  %2164 = vmatpush3.bf16.xpose.msk.msra.mxu1 %vm2552_vm1, %v2159_v22  ;;  %v330_v13 = vld [vmem:[%s2548_s25 + $0xe8] sm:$0xff]  ;;  %v345_v14 = vld [vmem:[%s2548_s25 + $0x160] sm:$0xff]  ;;  %v1026_v16 = vld [vmem:[%s3158_s4 + $0x10] sm:$0xff]  ;;  %v2138_v17 = vpack.c.bf16 %v312_v11, %v311_v10 }
  0x29   : > { %2119 = vmatprep.subr.msk.bf16.mxu0 %vm2552_vm1, %v2117_v31  ;;  %2167 = vmatprep.subr.msk.bf16.mxu1 %vm2552_vm1, %v2165_v32  ;;  %v346_v15 = vld [vmem:[%s2548_s25 + $0x168] sm:$0xff]  ;;  %v1027_v18 = vld [vmem:[%s3158_s4 + $0x18] sm:$0xff]  ;;  %v2141_v19 = vpack.c.bf16 %v330_v13, %v329_v12  ;;  %v313_v23 = vld [vmem:[%s2548_s25 + $0x60] sm:$0xff] }
  0x2a   : > { %443 = vperm.xlu0 %2366, %v377_v57   ;;  %v2189_v20 = vpack.c.bf16 %v346_v15, %v345_v14  ;;  %v1029_v22 = vld [vmem:[%s3158_s4 + $0x28] sm:$0xff]  ;;  %v331_v25 = vld [vmem:[%s2548_s25 + $0xf0] sm:$0xff]  ;;  %v332_v26 = vld [vmem:[%s2548_s25 + $0xf8] sm:$0xff] }
  0x2b   : > { %448 = vperm.xlu1 %2367, %v378_v58   ;;  %v314_v24 = vld [vmem:[%s2548_s25 + $0x68] sm:$0xff]  ;;  %v347_v27 = vld [vmem:[%s2548_s25 + $0x170] sm:$0xff]  ;;  %v348_v28 = vld [vmem:[%s2548_s25 + $0x178] sm:$0xff] }
  0x2c   : > { %v1030_v29 = vld [vmem:[%s3158_s4 + $0x30] sm:$0xff]  ;;  %v2144_v30 = vpack.c.bf16 %v314_v24, %v313_v23  ;;  %v1031_v31 = vld [vmem:[%s3158_s4 + $0x38] sm:$0xff]  ;;  %v2195_v33 = vpack.c.bf16 %v348_v28, %v347_v27  ;;  %v1032_v34 = vld [vmem:[%s3158_s4 + $0x40] sm:$0xff] }
  0x2d   : > { %v1033_v35 = vld [vmem:[%s3158_s4 + $0x48] sm:$0xff]  ;;  %v315_v36 = vld [vmem:[%s2548_s25 + $0x70] sm:$0xff]  ;;  %v316_v37 = vld [vmem:[%s2548_s25 + $0x78] sm:$0xff] }
  0x2e   : > { %453 = vperm.xlu0 %2366, %v379_v2   ;;  %v1034_v38 = vld [vmem:[%s3158_s4 + $0x50] sm:$0xff]  ;;  %v1035_v40 = vld [vmem:[%s3158_s4 + $0x58] sm:$0xff]  ;;  %v1036_v41 = vld [vmem:[%s3158_s4 + $0x60] sm:$0xff] }
  0x2f   : > { %458 = vperm.xlu1 %2367, %v380_v5   ;;  %v1039_v44 = vld [vmem:[%s3158_s4 + $0x78] sm:$0xff]  ;;  %v350_v45 = vld [vmem:[%s3155_s1 + $0x8] sm:$0xff]  ;;  %v351_v46 = vld [vmem:[%s3155_s1 + $0x10] sm:$0xff] }
  0x30   : > { %2122 = vmatpush3.bf16.xpose.msk.msra.mxu0 %vm2552_vm1, %v2120_v39  ;;  %2170 = vmatpush3.bf16.xpose.msk.msra.mxu1 %vm2552_vm1, %v2165_v32  ;;  %v2147_v32 = vpack.c.bf16 %v332_v26, %v331_v25  ;;  %v2150_v39 = vpack.c.bf16 %v316_v37, %v315_v36  ;;  %v353_v47 = vld [vmem:[%s3155_s1 + $0x20] sm:$0xff]  ;;  %v355_v48 = vld [vmem:[%s3155_s1 + $0x30] sm:$0xff]  ;;  %v356_v49 = vld [vmem:[%s3155_s1 + $0x38] sm:$0xff] }
  0x31   : > { %2125 = vmatprep.subr.msk.bf16.mxu0 %vm2552_vm1, %v2123_v42  ;;  %2173 = vmatprep.subr.msk.bf16.mxu1 %vm2552_vm1, %v2171_v43  ;;  %v1037_v42 = vld [vmem:[%s3158_s4 + $0x68] sm:$0xff]  ;;  %v357_v50 = vld [vmem:[%s3155_s1 + $0x40] sm:$0xff]  ;;  %v359_v52 = vld [vmem:[%s3155_s1 + $0x50] sm:$0xff] }
  0x32   : > { %1042 = vperm.xlu0 %2366, %v1024_v8   ;;  %v358_v51 = vld [vmem:[%s3155_s1 + $0x48] sm:$0xff]  ;;  %v361_v54 = vld [vmem:[%s3155_s1 + $0x60] sm:$0xff]  ;;  %v364_v57 = vld [vmem:[%s3155_s1 + $0x78] sm:$0xff] }
  0x33   : > { %1047 = vperm.xlu1 %2367, %v1025_v9   ;;  %v2853_v58 = vld [vmem:[%s3157_s3] sm:$0xff] }
  0x36   : > { %1052 = vperm.xlu0 %2366, %v1026_v16  }
  0x37   : > { %1057 = vperm.xlu1 %2367, %v1027_v18  }
  0x38   : > { %2128 = vmatpush3.bf16.xpose.msk.msra.mxu0 %vm2552_vm1, %v2126_v53  ;;  %2176 = vmatpush3.bf16.xpose.msk.msra.mxu1 %vm2552_vm1, %v2171_v43  ;;  %v1038_v43 = vld [vmem:[%s3158_s4 + $0x70] sm:$0xff]  ;;  %v360_v53 = vld [vmem:[%s3155_s1 + $0x58] sm:$0xff] }
  0x39   : > { %2131 = vmatprep.subr.msk.bf16.mxu0 %vm2552_vm1, %v2129_v55  ;;  %2179 = vmatprep.subr.msk.bf16.mxu1 %vm2552_vm1, %v2177_v56  ;;  %v362_v55 = vld [vmem:[%s3155_s1 + $0x68] sm:$0xff] }
  0x3a   : > { %1062 = vperm.xlu0 %2366, %v1028_v21  }
  0x3b   : > { %1067 = vperm.xlu1 %2367, %v1029_v22  }
  0x3e   : > { %1072 = vperm.xlu0 %2366, %v1030_v29  }
  0x3f   : > { %1077 = vperm.xlu1 %2367, %v1031_v31  }
  0x40   : > { %2134 = vmatpush3.bf16.xpose.msk.msra.mxu0 %vm2552_vm1, %v2132_v3  ;;  %2182 = vmatpush3.bf16.xpose.msk.msra.mxu1 %vm2552_vm1, %v2177_v56  ;;  %v363_v56 = vld [vmem:[%s3155_s1 + $0x70] sm:$0xff] }
  0x41   : > { %2137 = vmatprep.subr.msk.bf16.mxu0 %vm2552_vm1, %v2135_v6  ;;  %2185 = vmatprep.subr.msk.bf16.mxu1 %vm2552_vm1, %v2183_v7 }
  0x42   : > { %1082 = vperm.xlu0 %2366, %v1032_v34  }
  0x43   : > { %1087 = vperm.xlu1 %2367, %v1033_v35  }
  0x46   : > { %1092 = vperm.xlu0 %2366, %v1034_v38  }
  0x47   : > { %1097 = vperm.xlu1 %2367, %v1035_v40  }
  0x48   : > { %2140 = vmatpush3.bf16.xpose.msk.msra.mxu0 %vm2552_vm1, %v2138_v17  ;;  %2188 = vmatpush3.bf16.xpose.msk.msra.mxu1 %vm2552_vm1, %v2183_v7 }
  0x49   : > { %2143 = vmatprep.subr.msk.bf16.mxu0 %vm2552_vm1, %v2141_v19  ;;  %2191 = vmatprep.subr.msk.bf16.mxu1 %vm2552_vm1, %v2189_v20 }
  0x4a   : > { %1102 = vperm.xlu0 %2366, %v1036_v41  }
  0x4b   : > { %1107 = vperm.xlu1 %2367, %v1037_v42  }
  0x4e   : > { %1112 = vperm.xlu0 %2366, %v1038_v43  }
  0x4f   : > { %1117 = vperm.xlu1 %2367, %v1039_v44  }
  0x50   : > { %2146 = vmatpush3.bf16.xpose.msk.msra.mxu0 %vm2552_vm1, %v2144_v30  ;;  %2194 = vmatpush3.bf16.xpose.msk.msra.mxu1 %vm2552_vm1, %v2189_v20 }
  0x51   : > { %2149 = vmatprep.subr.msk.bf16.mxu0 %vm2552_vm1, %v2147_v32  ;;  %2197 = vmatprep.subr.msk.bf16.mxu1 %vm2552_vm1, %v2195_v33 }
  0x58   : > { %2152 = vmatpush3.bf16.xpose.msk.msra.mxu0 %vm2552_vm1, %v2150_v39  ;;  %2200 = vmatpush3.bf16.xpose.msk.msra.mxu1 %vm2552_vm1, %v2195_v33 }
  0x5f   : > { %1846 = vmatmul.mubr.msk.f32.vlgmr.msra.gmra.mrb[0].mxu0 %vm461_vm0, %v2531_v0  ;;  %1991 = vmatmul.mubr.msk.f32.vlgmr.msra.gmra.mrb[0].mxu1 %vm461_vm0, %v350_v45  ;;  %v354_v0 = vld [vmem:[%s3155_s1 + $0x28] sm:$0xff] }
  0x60   : > { %1847 = vmatprep.mubr.msk.f32.mxu0 %vm461_vm0, %v350_v45  ;;  %1993 = vmatprep.mubr.msk.f32.mxu1 %vm461_vm0, %v351_v46 }
  0x63   : > { %1848 = vmatmul.mubr.msk.f32.gmra.mrb[2].mxu0 %vm461_vm0, %v350_v45  ;;  %1994 = vmatmul.mubr.msk.f32.gmra.mrb[2].mxu1 %vm461_vm0, %v352_v4 }
  0x64   : > { %1849 = vmatprep.mubr.msk.f32.mxu0 %vm461_vm0, %v351_v46  ;;  %1996 = vmatprep.mubr.msk.f32.mxu1 %vm461_vm0, %v353_v47 }
  0x67   : > { %1850 = vmatmul.mubr.msk.f32.gmra.mrb[4].mxu0 %vm461_vm0, %v351_v46  ;;  %1997 = vmatmul.mubr.msk.f32.gmra.mrb[4].mxu1 %vm461_vm0, %v354_v0 }
  0x68   : > { %1851 = vmatprep.mubr.msk.f32.mxu0 %vm461_vm0, %v352_v4  ;;  %1999 = vmatprep.mubr.msk.f32.mxu1 %vm461_vm0, %v355_v48 }
  0x6b   : > { %1852 = vmatmul.mubr.msk.f32.gmra.mrb[6].mxu0 %vm461_vm0, %v352_v4  ;;  %2000 = vmatmul.mubr.msk.f32.gmra.mrb[6].mxu1 %vm461_vm0, %v356_v49 }
  0x6c   : > { %1853 = vmatprep.mubr.msk.f32.mxu0 %vm461_vm0, %v353_v47  ;;  %2002 = vmatprep.mubr.msk.f32.mxu1 %vm461_vm0, %v357_v50 }
  0x6f   : > { %1854 = vmatmul.mubr.msk.f32.gmra.mrb[8].mxu0 %vm461_vm0, %v353_v47  ;;  %2003 = vmatmul.mubr.msk.f32.gmra.mrb[8].mxu1 %vm461_vm0, %v358_v51 }
  0x70   : > { %1855 = vmatprep.mubr.msk.f32.mxu0 %vm461_vm0, %v354_v0  ;;  %2005 = vmatprep.mubr.msk.f32.mxu1 %vm461_vm0, %v359_v52 }
  0x73   : > { %1856 = vmatmul.mubr.msk.f32.gmra.mrb[10].mxu0 %vm461_vm0, %v354_v0  ;;  %2006 = vmatmul.mubr.msk.f32.gmra.mrb[10].mxu1 %vm461_vm0, %v360_v53 }
  0x74   : > { %1857 = vmatprep.mubr.msk.f32.mxu0 %vm461_vm0, %v355_v48  ;;  %2008 = vmatprep.mubr.msk.f32.mxu1 %vm461_vm0, %v361_v54 }
  0x77   : > { %1858 = vmatmul.mubr.msk.f32.gmra.mrb[12].mxu0 %vm461_vm0, %v355_v48  ;;  %2009 = vmatmul.mubr.msk.f32.gmra.mrb[12].mxu1 %vm461_vm0, %v362_v55 }
  0x78   : > { %1859 = vmatprep.mubr.msk.f32.mxu0 %vm461_vm0, %v356_v49  ;;  %2011 = vmatprep.mubr.msk.f32.mxu1 %vm461_vm0, %v363_v56 }
  0x7b   : > { %1860 = vmatmul.mubr.msk.f32.gmra.mrb[14].mxu0 %vm461_vm0, %v356_v49  ;;  %2012 = vmatmul.mubr.msk.f32.gmra.mrb[14].mxu1 %vm461_vm0, %v364_v57 }
  0x7c   : > { %1861 = vmatprep.mubr.msk.f32.mxu0 %vm461_vm0, %v357_v50  ;;  %1184 = vmatprep.mubr.f32.mxu1 %v2433_v59 }
  0x7f   : > { %1862 = vmatmul.mubr.msk.f32.gmra.mrb[16].mxu0 %vm461_vm0, %v357_v50 }
  0x80   : > { %1863 = vmatprep.mubr.msk.f32.mxu0 %vm461_vm0, %v358_v51 }
  0x83   : > { %1864 = vmatmul.mubr.msk.f32.gmra.mrb[18].mxu0 %vm461_vm0, %v358_v51 }
  0x84   : > { %1865 = vmatprep.mubr.msk.f32.mxu0 %vm461_vm0, %v359_v52 }
  0x87   : > { %1866 = vmatmul.mubr.msk.f32.gmra.mrb[20].mxu0 %vm461_vm0, %v359_v52 }
  0x88   : > { %1867 = vmatprep.mubr.msk.f32.mxu0 %vm461_vm0, %v360_v53 }
  0x8b   : > { %1868 = vmatmul.mubr.msk.f32.gmra.mrb[22].mxu0 %vm461_vm0, %v360_v53 }
  0x8c   : > { %1869 = vmatprep.mubr.msk.f32.mxu0 %vm461_vm0, %v361_v54 }
  0x8f   : > { %1870 = vmatmul.mubr.msk.f32.gmra.mrb[24].mxu0 %vm461_vm0, %v361_v54 }
  0x90   : > { %1871 = vmatprep.mubr.msk.f32.mxu0 %vm461_vm0, %v362_v55 }
  0x91   : > { %v394_v60 = vpop.permute.xlu1 %393  ;;  %v384_v61 = vpop.permute.xlu0 %383 }
  0x93   : > { %1872 = vmatmul.mubr.msk.f32.gmra.mrb[26].mxu0 %vm461_vm0, %v362_v55 }
  0x94   : > { %1873 = vmatprep.mubr.msk.f32.mxu0 %vm461_vm0, %v363_v56 }
  0x95   : > { %v399_v62 = vpop.permute.xlu1 %398  ;;  %v389_v63 = vpop.permute.xlu0 %388 }
  0x97   : > { %1874 = vmatmul.mubr.msk.f32.gmra.mrb[28].mxu0 %vm461_vm0, %v363_v56 }
  0x98   : > { %1875 = vmatprep.mubr.msk.f32.mxu0 %vm461_vm0, %v364_v57 }
  0x99   : > { %v2857_v1 = vpop.permute.xlu1 %408  ;;  %v2859_v2 = vpop.permute.xlu0 %403 }
  0x9b   : > { %1876 = vmatmul.mubr.msk.f32.gmra.mrb[30].mxu0 %vm461_vm0, %v364_v57 }
  0x9c   : > { %2046 = vmatprep.mubr.f32.mxu0 %v2853_v58 }
  0x9d   : > { %v2863_v19 = vpop.permute.xlu0 %413 }
  0x9e   : > { %v2861_v11 = vpop.permute.xlu1 %418 }
  0xa1   : > { %v2869_v42 = vpop.permute.xlu0 %423 }
  0xa2   : > { %v2865_v35 = vpop.permute.xlu1 %428 }
  0xa6   : > { %v2873_v55 = vpop.permute.xlu1 %438 }
 0x132   : > { %v720_v3 = vpop.f32.mrb[0].mxu0  ;;  %v1992_v5 = vpop.f32.mrb[0].mxu1 }
 0x133   : > { %v722_v6 = vpop.f32.mrb[1].mxu0  ;;  %v887_v7 = vadd.f32 %v1992_v5, %v389_v63  ;;  %v881_v8 = vpop.f32.mrb[1].mxu1  ;;  %v721_v9 = vadd.f32 %v720_v3, %v384_v61 }
 0x134   : > { %v882_v10 = vadd.f32 %v881_v8, %v384_v61  ;;  %v723_v13 = vadd.f32 %v722_v6, %v384_v61 }
 0x135   : > { %v965_v12 = vmax.f32 %v887_v7, 0.0  ;;  %v960_v23 = vmax.f32 %v721_v9, 0.0  ;;  %v2875_v7 = vpop.permute.xlu0 %433 }
 0x136   : > { %v726_v14 = vpop.f32.mrb[2].mxu0  ;;  %v962_v15 = vmax.f32 %v882_v10, 0.0  ;;  %v1995_v17 = vpop.f32.mrb[2].mxu1  ;;  %v961_v27 = vmax.f32 %v723_v13, 0.0 }
 0x137   : > { %v727_v16 = vadd.f32 %v726_v14, %v389_v63  ;;  %v728_v18 = vpop.f32.mrb[3].mxu0  ;;  %v897_v20 = vadd.f32 %v1995_v17, %v399_v62  ;;  %v891_v22 = vpop.f32.mrb[3].mxu1 }
 0x138   : > { %v729_v21 = vadd.f32 %v728_v18, %v389_v63  ;;  %v2233_v24 = vpack.c.bf16 %v965_v12, %v962_v15  ;;  %v892_v26 = vadd.f32 %v891_v22, %v394_v60  ;;  %v2882_v22 = vpop.permute.xlu1 %448 }
 0x139   : > { %v963_v25 = vmax.f32 %v727_v16, 0.0  ;;  %v971_v28 = vmax.f32 %v897_v20, 0.0 }
 0x13a   : > { %v964_v29 = vmax.f32 %v729_v21, 0.0  ;;  %v732_v30 = vpop.f32.mrb[4].mxu0  ;;  %v968_v32 = vmax.f32 %v892_v26, 0.0  ;;  %v1998_v33 = vpop.f32.mrb[4].mxu1  ;;  %2234 = vmatprep.subr.bf16.mxu0 %v2233_v24 }
 0x13b   : > { %v2203_v31 = vpack.c.bf16 %v963_v25, %v960_v23  ;;  %v734_v34 = vpop.f32.mrb[5].mxu0  ;;  %v907_v37 = vadd.f32 %v1998_v33, %v2857_v1  ;;  %v901_v38 = vpop.f32.mrb[5].mxu1  ;;  %2236 = vmatpush3.bf16.msra.mxu0 %v2233_v24  ;;  %v733_v40 = vadd.f32 %v732_v30, %v394_v60 }
 0x13c   : > { %v2201_v36 = vpack.c.bf16 %v964_v29, %v961_v27  ;;  %v2237_v39 = vpack.c.bf16 %v971_v28, %v968_v32  ;;  %v902_v41 = vadd.f32 %v901_v38, %v2859_v2  ;;  %v735_v44 = vadd.f32 %v734_v34, %v394_v60  ;;  %v2887_v29 = vpop.permute.xlu0 %443 }
 0x13d   : > { %v977_v43 = vmax.f32 %v907_v37, 0.0  ;;  %v966_v51 = vmax.f32 %v733_v40, 0.0 }
 0x13e   : > { %v738_v45 = vpop.f32.mrb[6].mxu0  ;;  %2202 = vmatprep.subr.bf16.mxu1 %v2201_v36  ;;  %v974_v46 = vmax.f32 %v902_v41, 0.0  ;;  %v2001_v47 = vpop.f32.mrb[6].mxu1  ;;  %2238 = vmatprep.subr.bf16.mxu0 %v2237_v39  ;;  %v967_v56 = vmax.f32 %v735_v44, 0.0 }
 0x13f   : > { %v739_v4 = vadd.f32 %v738_v45, %v399_v62  ;;  %v740_v0 = vpop.f32.mrb[7].mxu0  ;;  %2204 = vmatpush1.bf16.msra.mxu1 %v2203_v31  ;;  %v917_v48 = vadd.f32 %v2001_v47, %v2861_v11  ;;  %v911_v50 = vpop.f32.mrb[7].mxu1  ;;  %2240 = vmatpush3.bf16.msra.mxu0 %v2237_v39 }
 0x140   : > { %v741_v49 = vadd.f32 %v740_v0, %v399_v62  ;;  %v2241_v52 = vpack.c.bf16 %v977_v43, %v974_v46  ;;  %v912_v54 = vadd.f32 %v911_v50, %v2863_v19  ;;  %v2892_v45 = vpop.permute.xlu1 %458 }
 0x141   : > { %v969_v53 = vmax.f32 %v739_v4, 0.0  ;;  %v983_v57 = vmax.f32 %v917_v48, 0.0 }
 0x142   : > { %v970_v60 = vmax.f32 %v741_v49, 0.0  ;;  %v744_v61 = vpop.f32.mrb[8].mxu0  ;;  %v980_v3 = vmax.f32 %v912_v54, 0.0  ;;  %v2004_v5 = vpop.f32.mrb[8].mxu1  ;;  %2242 = vmatprep.subr.bf16.mxu0 %v2241_v52 }
 0x143   : > { %v2207_v63 = vpack.c.bf16 %v969_v53, %v966_v51  ;;  %v746_v6 = vpop.f32.mrb[9].mxu0  ;;  %v927_v8 = vadd.f32 %v2004_v5, %v2865_v35  ;;  %v921_v9 = vpop.f32.mrb[9].mxu1  ;;  %2244 = vmatpush3.bf16.msra.mxu0 %v2241_v52  ;;  %v745_v12 = vadd.f32 %v744_v61, %v2859_v2 }
 0x144   : > { %v2205_v62 = vpack.c.bf16 %v970_v60, %v967_v56  ;;  %v2245_v10 = vpack.c.bf16 %v983_v57, %v980_v3  ;;  %v922_v13 = vadd.f32 %v921_v9, %v2869_v42  ;;  %v747_v15 = vadd.f32 %v746_v6, %v2859_v2  ;;  %v2896_v51 = vpop.permute.xlu0 %453 }
 0x145   : > { %v989_v14 = vmax.f32 %v927_v8, 0.0  ;;  %v972_v26 = vmax.f32 %v745_v12, 0.0 }
 0x146   : > { %v750_v16 = vpop.f32.mrb[10].mxu0  ;;  %2206 = vmatprep.subr.bf16.mxu1 %v2205_v62  ;;  %v986_v17 = vmax.f32 %v922_v13, 0.0  ;;  %v2007_v20 = vpop.f32.mrb[10].mxu1  ;;  %2246 = vmatprep.subr.bf16.mxu0 %v2245_v10  ;;  %v973_v30 = vmax.f32 %v747_v15, 0.0 }
 0x147   : > { %v751_v18 = vadd.f32 %v750_v16, %v2857_v1  ;;  %v752_v21 = vpop.f32.mrb[11].mxu0  ;;  %2208 = vmatpush1.bf16.msra.mxu1 %v2207_v63  ;;  %v937_v23 = vadd.f32 %v2007_v20, %v2873_v55  ;;  %v931_v25 = vpop.f32.mrb[11].mxu1  ;;  %2248 = vmatpush3.bf16.msra.mxu0 %v2245_v10 }
 0x148   : > { %v753_v24 = vadd.f32 %v752_v21, %v2857_v1  ;;  %v2249_v27 = vpack.c.bf16 %v989_v14, %v986_v17  ;;  %v932_v28 = vadd.f32 %v931_v25, %v2875_v7  ;;  %v2908_v17 = vld [vmem:[%s3157_s3 + $0x8] sm:$0xff] }
 0x149   : > { %v975_v2 = vmax.f32 %v751_v18, 0.0  ;;  %v995_v31 = vmax.f32 %v937_v23, 0.0 }
 0x14a   : > { %v976_v32 = vmax.f32 %v753_v24, 0.0  ;;  %v756_v33 = vpop.f32.mrb[12].mxu0  ;;  %v992_v36 = vmax.f32 %v932_v28, 0.0  ;;  %v2010_v37 = vpop.f32.mrb[12].mxu1  ;;  %2250 = vmatprep.subr.bf16.mxu0 %v2249_v27  ;;  %v2926_v28 = vld [vmem:[%s3157_s3 + $0x20] sm:$0xff] }
 0x14b   : > { %v2211_v34 = vpack.c.bf16 %v975_v2, %v972_v26  ;;  %v758_v38 = vpop.f32.mrb[13].mxu0  ;;  %v947_v1 = vadd.f32 %v2010_v37, %v2882_v22  ;;  %v941_v40 = vpop.f32.mrb[13].mxu1  ;;  %2252 = vmatpush3.bf16.msra.mxu0 %v2249_v27  ;;  %v757_v43 = vadd.f32 %v756_v33, %v2863_v19  ;;  %v2920_v27 = vld [vmem:[%s3157_s3 + $0x18] sm:$0xff] }
 0x14c   : > { %v2209_v39 = vpack.c.bf16 %v976_v32, %v973_v30  ;;  %v2253_v41 = vpack.c.bf16 %v995_v31, %v992_v36  ;;  %v942_v44 = vadd.f32 %v941_v40, %v2887_v29  ;;  %v759_v4 = vadd.f32 %v758_v38, %v2863_v19  ;;  %v2936_v36 = vld [vmem:[%s3157_s3 + $0x28] sm:$0xff] }
 0x14d   : > { %v1001_v46 = vmax.f32 %v947_v1, 0.0  ;;  %v978_v56 = vmax.f32 %v757_v43, 0.0 }
 0x14e   : > { %v762_v47 = vpop.f32.mrb[14].mxu0  ;;  %2210 = vmatprep.subr.bf16.mxu1 %v2209_v39  ;;  %v998_v0 = vmax.f32 %v942_v44, 0.0  ;;  %v2013_v49 = vpop.f32.mrb[14].mxu1  ;;  %2254 = vmatprep.subr.bf16.mxu0 %v2253_v41  ;;  %v979_v61 = vmax.f32 %v759_v4, 0.0  ;;  %v2948_v44 = vld [vmem:[%s3157_s3 + $0x38] sm:$0xff]  ;;  %v2954_v4 = vld [vmem:[%s3157_s3 + $0x40] sm:$0xff] }
 0x14f   : > { %v763_v48 = vadd.f32 %v762_v47, %v2861_v11  ;;  %v764_v50 = vpop.f32.mrb[15].mxu0  ;;  %2212 = vmatpush1.bf16.msra.mxu1 %v2211_v34  ;;  %v957_v52 = vadd.f32 %v2013_v49, %v2892_v45  ;;  %v951_v54 = vpop.f32.mrb[15].mxu1  ;;  %2256 = vmatpush3.bf16.msra.mxu0 %v2253_v41 }
 0x150   : > { %v765_v53 = vadd.f32 %v764_v50, %v2861_v11  ;;  %v2257_v57 = vpack.c.bf16 %v1001_v46, %v998_v0  ;;  %v952_v60 = vadd.f32 %v951_v54, %v2896_v51 }
 0x151   : > { %v981_v19 = vmax.f32 %v763_v48, 0.0  ;;  %v1007_v63 = vmax.f32 %v957_v52, 0.0  ;;  %v1017_v52 = vld [vmem:[%s3157_s3 + $0x48] sm:$0xff] }
 0x152   : > { %v982_v3 = vmax.f32 %v765_v53, 0.0  ;;  %v768_v5 = vpop.f32.mrb[16].mxu0  ;;  %v1004_v62 = vmax.f32 %v952_v60, 0.0  ;;  %2258 = vmatprep.subr.bf16.mxu0 %v2257_v57 }
 0x153   : > { %v2215_v6 = vpack.c.bf16 %v981_v19, %v978_v56  ;;  %v770_v8 = vpop.f32.mrb[17].mxu0  ;;  %2260 = vmatpush3.bf16.msra.mxu0 %v2257_v57  ;;  %v769_v11 = vadd.f32 %v768_v5, %v2869_v42  ;;  %v1020_v5 = vld [vmem:[%s3157_s3 + $0x60] sm:$0xff] }
 0x154   : > { %v2213_v9 = vpack.c.bf16 %v982_v3, %v979_v61  ;;  %v2261_v10 = vpack.c.bf16 %v1007_v63, %v1004_v62  ;;  %v771_v12 = vadd.f32 %v770_v8, %v2869_v42  ;;  %v2913_v42 = vld [vmem:[%s3157_s3 + $0x10] sm:$0xff] }
 0x155   : > { %v984_v18 = vmax.f32 %v769_v11, 0.0  ;;  %v1021_v11 = vld [vmem:[%s3157_s3 + $0x68] sm:$0xff] }
 0x156   : > { %v774_v13 = vpop.f32.mrb[18].mxu0  ;;  %2214 = vmatprep.subr.bf16.mxu1 %v2213_v9  ;;  %2262 = vmatprep.subr.bf16.mxu0 %v2261_v10  ;;  %v985_v21 = vmax.f32 %v771_v12, 0.0 }
 0x157   : > { %v775_v14 = vadd.f32 %v774_v13, %v2865_v35  ;;  %v776_v15 = vpop.f32.mrb[19].mxu0  ;;  %2216 = vmatpush1.bf16.msra.mxu1 %v2215_v6  ;;  %2264 = vmatpush3.bf16.msra.mxu0 %v2261_v10 }
 0x158   : > { %v777_v16 = vadd.f32 %v776_v15, %v2865_v35 }
 0x159   : > { %v987_v20 = vmax.f32 %v775_v14, 0.0 }
 0x15a   : > { %v988_v23 = vmax.f32 %v777_v16, 0.0  ;;  %v780_v24 = vpop.f32.mrb[20].mxu0  ;;  %2047 = vmatmul.mubr.f32.vlgmr.msra.gmra.mrb[32].mxu0 %v2908_v17 }
 0x15b   : > { %v2219_v25 = vpack.c.bf16 %v987_v20, %v984_v18  ;;  %v782_v35 = vpop.f32.mrb[21].mxu0  ;;  %2049 = vmatprep.mubr.f32.mxu0 %v2913_v42  ;;  %v781_v2 = vadd.f32 %v780_v24, %v2875_v7  ;;  %v3015_v20 = vpop.permute.xlu0 %1042 }
 0x15c   : > { %v2217_v26 = vpack.c.bf16 %v988_v23, %v985_v21  ;;  %v783_v30 = vadd.f32 %v782_v35, %v2875_v7  ;;  %v2941_v7 = vld [vmem:[%s3157_s3 + $0x30] sm:$0xff] }
 0x15d   : > { %v990_v37 = vmax.f32 %v781_v2, 0.0 }
 0x15e   : > { %v786_v31 = vpop.f32.mrb[22].mxu0  ;;  %2218 = vmatprep.subr.bf16.mxu1 %v2217_v26  ;;  %2050 = vmatmul.mubr.f32.gmra.mrb[34].mxu0 %v2920_v27  ;;  %v991_v39 = vmax.f32 %v783_v30, 0.0 }
 0x15f   : > { %v787_v32 = vadd.f32 %v786_v31, %v2873_v55  ;;  %v788_v33 = vpop.f32.mrb[23].mxu0  ;;  %2220 = vmatpush1.bf16.msra.mxu1 %v2219_v25  ;;  %2052 = vmatprep.mubr.f32.mxu0 %v2926_v28  ;;  %v3019_v21 = vpop.permute.xlu0 %1052 }
 0x160   : > { %v789_v34 = vadd.f32 %v788_v33, %v2873_v55 }
 0x161   : > { %v993_v38 = vmax.f32 %v787_v32, 0.0 }
 0x162   : > { %v994_v1 = vmax.f32 %v789_v34, 0.0  ;;  %v792_v40 = vpop.f32.mrb[24].mxu0  ;;  %2053 = vmatmul.mubr.f32.gmra.mrb[36].mxu0 %v2936_v36 }
 0x163   : > { %v2223_v41 = vpack.c.bf16 %v993_v38, %v990_v37  ;;  %v794_v55 = vpop.f32.mrb[25].mxu0  ;;  %2055 = vmatprep.mubr.f32.mxu0 %v2941_v7  ;;  %v793_v46 = vadd.f32 %v792_v40, %v2887_v29  ;;  %v3023_v24 = vpop.permute.xlu0 %1062 }
 0x164   : > { %v2221_v43 = vpack.c.bf16 %v994_v1, %v991_v39  ;;  %v795_v47 = vadd.f32 %v794_v55, %v2887_v29  ;;  %v1018_v29 = vld [vmem:[%s3157_s3 + $0x50] sm:$0xff] }
 0x165   : > { %v996_v53 = vmax.f32 %v793_v46, 0.0 }
 0x166   : > { %v798_v0 = vpop.f32.mrb[26].mxu0  ;;  %2222 = vmatprep.subr.bf16.mxu1 %v2221_v43  ;;  %2056 = vmatmul.mubr.f32.gmra.mrb[38].mxu0 %v2948_v44  ;;  %v997_v56 = vmax.f32 %v795_v47, 0.0 }
 0x167   : > { %v799_v48 = vadd.f32 %v798_v0, %v2882_v22  ;;  %v800_v49 = vpop.f32.mrb[27].mxu0  ;;  %2224 = vmatpush1.bf16.msra.mxu1 %v2223_v41  ;;  %2058 = vmatprep.mubr.f32.mxu0 %v2954_v4  ;;  %v3029_v31 = vpop.permute.xlu0 %1072 }
 0x168   : > { %v801_v50 = vadd.f32 %v800_v49, %v2882_v22  ;;  %v1019_v22 = vld [vmem:[%s3157_s3 + $0x58] sm:$0xff] }
 0x169   : > { %v999_v54 = vmax.f32 %v799_v48, 0.0 }
 0x16a   : > { %v1000_v57 = vmax.f32 %v801_v50, 0.0  ;;  %v804_v19 = vpop.f32.mrb[28].mxu0  ;;  %2059 = vmatmul.mubr.f32.gmra.mrb[40].mxu0 %v1017_v52 }
 0x16b   : > { %v2227_v60 = vpack.c.bf16 %v999_v54, %v996_v53  ;;  %v806_v61 = vpop.f32.mrb[29].mxu0  ;;  %2061 = vmatprep.mubr.f32.mxu0 %v1018_v29  ;;  %v805_v3 = vadd.f32 %v804_v19, %v2896_v51  ;;  %v3038_v43 = vpop.permute.xlu0 %1082 }
 0x16c   : > { %v2225_v63 = vpack.c.bf16 %v1000_v57, %v997_v56  ;;  %v807_v6 = vadd.f32 %v806_v61, %v2896_v51  ;;  %v1022_v51 = vld [vmem:[%s3157_s3 + $0x70] sm:$0xff] }
 0x16d   : > { %v1002_v12 = vmax.f32 %v805_v3, 0.0 }
 0x16e   : > { %v810_v62 = vpop.f32.mrb[30].mxu0  ;;  %2226 = vmatprep.subr.bf16.mxu1 %v2225_v63  ;;  %2062 = vmatmul.mubr.f32.gmra.mrb[42].mxu0 %v1019_v22  ;;  %v1003_v14 = vmax.f32 %v807_v6, 0.0 }
 0x16f   : > { %v811_v8 = vadd.f32 %v810_v62, %v2892_v45  ;;  %v812_v9 = vpop.f32.mrb[31].mxu0  ;;  %2228 = vmatpush1.bf16.msra.mxu1 %v2227_v60  ;;  %2064 = vmatprep.mubr.f32.mxu0 %v1020_v5 }
 0x170   : > { %v813_v10 = vadd.f32 %v812_v9, %v2892_v45  ;;  %v1023_v45 = vld [vmem:[%s3157_s3 + $0x78] sm:$0xff] }
 0x171   : > { %v1005_v13 = vmax.f32 %v811_v8, 0.0 }
 0x172   : > { %v1006_v15 = vmax.f32 %v813_v10, 0.0  ;;  %2065 = vmatmul.mubr.f32.gmra.mrb[44].mxu0 %v1021_v11 }
 0x173   : > { %v2231_v16 = vpack.c.bf16 %v1005_v13, %v1002_v12  ;;  %2067 = vmatprep.mubr.f32.mxu0 %v1022_v51 }
 0x174   : > { %v2229_v18 = vpack.c.bf16 %v1006_v15, %v1003_v14 }
 0x176   : > { %2230 = vmatprep.subr.bf16.mxu1 %v2229_v18  ;;  %2068 = vmatmul.mubr.f32.gmra.mrb[46].mxu0 %v1023_v45 }
 0x177   : > { %2232 = vmatpush1.bf16.msra.mxu1 %v2231_v16  ;;  %1541 = vmatprep.mubr.f32.mxu0 %v2433_v59 }
 0x17a   : > { %1185 = vmatmul.mubr.f32.vlgmr.msra.gmra.mrb[16].mxu1 %v2853_v58  ;;  %v2434_v58 = vmov 0.0|0.0  }
 0x17b   : > { %1190 = vmatprep.mubr.f32.mxu1 %v2433_v59  ;;  %2297 = vmatprep.subr.bf16.mxu1 %v2434_v58 }
 0x17e   : > { %1191 = vmatmul.mubr.f32.gmra.mrb[18].mxu1 %v2908_v17  ;;  %v3013_v17 = vpop.permute.xlu1 %1047 }
 0x17f   : > { %1196 = vmatprep.mubr.f32.mxu1 %v2433_v59 }
 0x182   : > { %1197 = vmatmul.mubr.f32.gmra.mrb[20].mxu1 %v2913_v42  ;;  %v3017_v42 = vpop.permute.xlu1 %1057 }
 0x183   : > { %1202 = vmatprep.mubr.f32.mxu1 %v2433_v59 }
 0x186   : > { %1203 = vmatmul.mubr.f32.gmra.mrb[22].mxu1 %v2920_v27  ;;  %v3021_v23 = vpop.permute.xlu1 %1067 }
 0x187   : > { %1208 = vmatprep.mubr.f32.mxu1 %v2433_v59 }
 0x18a   : > { %1209 = vmatmul.mubr.f32.gmra.mrb[24].mxu1 %v2926_v28 }
 0x18b   : > { %1214 = vmatprep.mubr.f32.mxu1 %v2433_v59 }
 0x18e   : > { %1215 = vmatmul.mubr.f32.gmra.mrb[26].mxu1 %v2936_v36 }
 0x18f   : > { %1220 = vmatprep.mubr.f32.mxu1 %v2433_v59 }
 0x192   : > { %1221 = vmatmul.mubr.f32.gmra.mrb[28].mxu1 %v2941_v7 }
 0x193   : > { %1226 = vmatprep.mubr.f32.mxu1 %v2433_v59 }
 0x196   : > { %1227 = vmatmul.mubr.f32.gmra.mrb[30].mxu1 %v2948_v44 }
 0x197   : > { %1232 = vmatprep.mubr.f32.mxu1 %v2433_v59 }
 0x19a   : > { %1233 = vmatmul.mubr.f32.gmra.mrb[32].mxu1 %v2954_v4 }
 0x19b   : > { %1238 = vmatprep.mubr.f32.mxu1 %v2433_v59 }
 0x19e   : > { %1239 = vmatmul.mubr.f32.gmra.mrb[34].mxu1 %v1017_v52 }
 0x19f   : > { %1244 = vmatprep.mubr.f32.mxu1 %v2433_v59 }
 0x1a2   : > { %1245 = vmatmul.mubr.f32.gmra.mrb[36].mxu1 %v1018_v29  ;;  %v3045_v29 = vpop.permute.xlu0 %1092 }
 0x1a3   : > { %1250 = vmatprep.mubr.f32.mxu1 %v2433_v59 }
 0x1a6   : > { %1251 = vmatmul.mubr.f32.gmra.mrb[38].mxu1 %v1019_v22  ;;  %v3055_v9 = vpop.permute.xlu0 %1102 }
 0x1a7   : > { %1256 = vmatprep.mubr.f32.mxu1 %v2433_v59 }
 0x1aa   : > { %1257 = vmatmul.mubr.f32.gmra.mrb[40].mxu1 %v1020_v5 }
 0x1ab   : > { %1262 = vmatprep.mubr.f32.mxu1 %v2433_v59 }
 0x1ae   : > { %1263 = vmatmul.mubr.f32.gmra.mrb[42].mxu1 %v1021_v11 }
 0x1af   : > { %1268 = vmatprep.mubr.f32.mxu1 %v2433_v59 }
 0x1b2   : > { %1269 = vmatmul.mubr.f32.gmra.mrb[44].mxu1 %v1022_v51 }
 0x1b3   : > { %1274 = vmatprep.mubr.f32.mxu1 %v2433_v59 }
 0x1b6   : > { %1275 = vmatmul.mubr.f32.gmra.mrb[46].mxu1 %v1023_v45 }
 0x1b7   : > { %2102 = vmatprep.mubr.msk.f32.mxu1 %vm2435_vm2, %v2433_v59  ;;  %v3027_v59 = vpop.permute.xlu1 %1077 }
 0x1bb   : > { %v3035_v40 = vpop.permute.xlu1 %1087 }
 0x1bf   : > { %v3043_v52 = vpop.permute.xlu1 %1097 }
 0x1c3   : > { %v3052_v6 = vpop.permute.xlu1 %1107 }
 0x1c7   : > { %v3060_v18 = vpop.permute.xlu1 %1117 }
 0x22d   : > { %v2048_v25 = vpop.f32.mrb[32].mxu0 }
 0x22e   : > { %v1353_v35 = vadd.f32 %v2048_v25, %v3013_v17  ;;  %v1347_v26 = vpop.f32.mrb[33].mxu0 }
 0x22f   : > { %v1348_v27 = vadd.f32 %v1347_v26, %v3015_v20 }
 0x230   : > { %v1431_v2 = vmax.f32 %v1353_v35, 0.0  ;;  %v3062_v35 = vpop.permute.xlu0 %1112 }
 0x231   : > { %v1428_v28 = vmax.f32 %v1348_v27, 0.0  ;;  %v2051_v30 = vpop.f32.mrb[34].mxu0 }
 0x232   : > { %v1363_v32 = vadd.f32 %v2051_v30, %v3017_v42  ;;  %v1357_v33 = vpop.f32.mrb[35].mxu0 }
 0x233   : > { %v2298_v34 = vpack.c.bf16 %v1431_v2, %v1428_v28  ;;  %v1358_v36 = vadd.f32 %v1357_v33, %v3019_v21 }
 0x234   : > { %v1437_v37 = vmax.f32 %v1363_v32, 0.0 }
 0x235   : > { %v1434_v38 = vmax.f32 %v1358_v36, 0.0  ;;  %v2054_v7 = vpop.f32.mrb[36].mxu0  ;;  %2299 = vmatpush3.bf16.msra.mxu1 %v2298_v34 }
 0x236   : > { %v1373_v39 = vadd.f32 %v2054_v7, %v3021_v23  ;;  %v1367_v1 = vpop.f32.mrb[37].mxu0  ;;  %2300 = vmatprep.subr.bf16.mxu1 %v2434_v58 }
 0x237   : > { %v2301_v41 = vpack.c.bf16 %v1437_v37, %v1434_v38  ;;  %v1368_v55 = vadd.f32 %v1367_v1, %v3023_v24 }
 0x238   : > { %v1443_v44 = vmax.f32 %v1373_v39, 0.0 }
 0x239   : > { %v1440_v46 = vmax.f32 %v1368_v55, 0.0  ;;  %v2057_v4 = vpop.f32.mrb[38].mxu0  ;;  %2302 = vmatpush3.bf16.msra.mxu1 %v2301_v41 }
 0x23a   : > { %v1383_v47 = vadd.f32 %v2057_v4, %v3027_v59  ;;  %v1377_v0 = vpop.f32.mrb[39].mxu0  ;;  %2303 = vmatprep.subr.bf16.mxu1 %v2434_v58 }
 0x23b   : > { %v2304_v48 = vpack.c.bf16 %v1443_v44, %v1440_v46  ;;  %v1378_v49 = vadd.f32 %v1377_v0, %v3029_v31  ;;  %v3075_v46 = vld [vmem:[%s3159_s5] sm:$0x1] }
 0x23c   : > { %v1449_v50 = vmax.f32 %v1383_v47, 0.0 }
 0x23d   : > { %v1446_v53 = vmax.f32 %v1378_v49, 0.0  ;;  %v2060_v54 = vpop.f32.mrb[40].mxu0  ;;  %2305 = vmatpush3.bf16.msra.mxu1 %v2304_v48 }
 0x23e   : > { %v1393_v56 = vadd.f32 %v2060_v54, %v3035_v40  ;;  %v1387_v57 = vpop.f32.mrb[41].mxu0  ;;  %2306 = vmatprep.subr.bf16.mxu1 %v2434_v58 }
 0x23f   : > { %v2307_v19 = vpack.c.bf16 %v1449_v50, %v1446_v53  ;;  %v1388_v60 = vadd.f32 %v1387_v57, %v3038_v43 }
 0x240   : > { %v1455_v61 = vmax.f32 %v1393_v56, 0.0 }
 0x241   : > { %v1452_v63 = vmax.f32 %v1388_v60, 0.0  ;;  %v2063_v22 = vpop.f32.mrb[42].mxu0  ;;  %2308 = vmatpush3.bf16.msra.mxu1 %v2307_v19 }
 0x242   : > { %v1403_v3 = vadd.f32 %v2063_v22, %v3043_v52  ;;  %v1397_v5 = vpop.f32.mrb[43].mxu0  ;;  %2309 = vmatprep.subr.bf16.mxu1 %v2434_v58 }
 0x243   : > { %v2310_v62 = vpack.c.bf16 %v1455_v61, %v1452_v63  ;;  %v1398_v8 = vadd.f32 %v1397_v5, %v3045_v29 }
 0x244   : > { %v1461_v10 = vmax.f32 %v1403_v3, 0.0 }
 0x245   : > { %v1458_v11 = vmax.f32 %v1398_v8, 0.0  ;;  %v2066_v12 = vpop.f32.mrb[44].mxu0  ;;  %2311 = vmatpush3.bf16.msra.mxu1 %v2310_v62 }
 0x246   : > { %v1413_v13 = vadd.f32 %v2066_v12, %v3052_v6  ;;  %v1407_v51 = vpop.f32.mrb[45].mxu0  ;;  %2312 = vmatprep.subr.bf16.mxu1 %v2434_v58 }
 0x247   : > { %v2313_v14 = vpack.c.bf16 %v1461_v10, %v1458_v11  ;;  %v1408_v15 = vadd.f32 %v1407_v51, %v3055_v9 }
 0x248   : > { %v1467_v16 = vmax.f32 %v1413_v13, 0.0 }
 0x249   : > { %v1464_v45 = vmax.f32 %v1408_v15, 0.0  ;;  %v2069_v25 = vpop.f32.mrb[46].mxu0  ;;  %2314 = vmatpush3.bf16.msra.mxu1 %v2313_v14 }
 0x24a   : > { %v1423_v26 = vadd.f32 %v2069_v25, %v3060_v18  ;;  %v1417_v27 = vpop.f32.mrb[47].mxu0  ;;  %2315 = vmatprep.subr.bf16.mxu1 %v2434_v58 }
 0x24b   : > { %v2316_v2 = vpack.c.bf16 %v1467_v16, %v1464_v45  ;;  %v1418_v28 = vadd.f32 %v1417_v27, %v3062_v35 }
 0x24c   : > { %v1473_v30 = vmax.f32 %v1423_v26, 0.0 }
 0x24d   : > { %v1186_v32 = vpop.f32.mrb[16].mxu1  ;;  %v1470_v33 = vmax.f32 %v1418_v28, 0.0  ;;  %2317 = vmatpush3.bf16.msra.mxu1 %v2316_v2 }
 0x24e   : > { %v1188_v34 = vpop.f32.mrb[17].mxu1  ;;  %2318 = vmatprep.subr.bf16.mxu1 %v2434_v58  ;;  %v1187_v37 = vadd.f32 %v1186_v32, %v3015_v20 }
 0x24f   : > { %v2319_v36 = vpack.c.bf16 %v1473_v30, %v1470_v33  ;;  %v1189_v38 = vadd.f32 %v1188_v34, %v3015_v20 }
 0x250   : > { %v1426_v55 = vmax.f32 %v1187_v37, 0.0 }
 0x251   : > { %v1192_v7 = vpop.f32.mrb[18].mxu1  ;;  %2320 = vmatpush3.bf16.msra.mxu1 %v2319_v36  ;;  %v1427_v58 = vmax.f32 %v1189_v38, 0.0 }
 0x252   : > { %v1193_v39 = vadd.f32 %v1192_v7, %v3013_v17  ;;  %v1194_v1 = vpop.f32.mrb[19].mxu1 }
 0x253   : > { %v1195_v41 = vadd.f32 %v1194_v1, %v3013_v17 }
 0x254   : > { %v1429_v44 = vmax.f32 %v1193_v39, 0.0  ;;  %2103 = vmatmul.mubr.f32.vlgmr.msra.gmra.mrb[48].mxu1 %v3075_v46 }
 0x255   : > { %v1430_v4 = vmax.f32 %v1195_v41, 0.0  ;;  %v1198_v47 = vpop.f32.mrb[20].mxu1 }
 0x256   : > { %v2267_v20 = vpack.c.bf16 %v1429_v44, %v1426_v55  ;;  %v1200_v0 = vpop.f32.mrb[21].mxu1  ;;  %v1199_v49 = vadd.f32 %v1198_v47, %v3019_v21 }
 0x257   : > { %v2265_v48 = vpack.c.bf16 %v1430_v4, %v1427_v58  ;;  %v1201_v50 = vadd.f32 %v1200_v0, %v3019_v21 }
 0x258   : > { %v1432_v57 = vmax.f32 %v1199_v49, 0.0 }
 0x259   : > { %v1204_v17 = vpop.f32.mrb[22].mxu1  ;;  %2266 = vmatprep.subr.bf16.mxu0 %v2265_v48  ;;  %v1433_v60 = vmax.f32 %v1201_v50, 0.0 }
 0x25a   : > { %v1205_v53 = vadd.f32 %v1204_v17, %v3017_v42  ;;  %v1206_v54 = vpop.f32.mrb[23].mxu1  ;;  %2268 = vmatpush1.bf16.msra.mxu0 %v2267_v20 }
 0x25b   : > { %v1207_v56 = vadd.f32 %v1206_v54, %v3017_v42 }
 0x25c   : > { %v1435_v19 = vmax.f32 %v1205_v53, 0.0 }
 0x25d   : > { %v1436_v61 = vmax.f32 %v1207_v56, 0.0  ;;  %v1210_v63 = vpop.f32.mrb[24].mxu1 }
 0x25e   : > { %v2271_v22 = vpack.c.bf16 %v1435_v19, %v1432_v57  ;;  %v1212_v3 = vpop.f32.mrb[25].mxu1  ;;  %v1211_v62 = vadd.f32 %v1210_v63, %v3023_v24 }
 0x25f   : > { %v2269_v5 = vpack.c.bf16 %v1436_v61, %v1433_v60  ;;  %v1213_v21 = vadd.f32 %v1212_v3, %v3023_v24 }
 0x260   : > { %v1438_v12 = vmax.f32 %v1211_v62, 0.0 }
 0x261   : > { %v1216_v8 = vpop.f32.mrb[26].mxu1  ;;  %2270 = vmatprep.subr.bf16.mxu0 %v2269_v5  ;;  %v1439_v51 = vmax.f32 %v1213_v21, 0.0 }
 0x262   : > { %v1217_v10 = vadd.f32 %v1216_v8, %v3021_v23  ;;  %v1218_v11 = vpop.f32.mrb[27].mxu1  ;;  %2272 = vmatpush1.bf16.msra.mxu0 %v2271_v22 }
 0x263   : > { %v1219_v42 = vadd.f32 %v1218_v11, %v3021_v23 }
 0x264   : > { %v1441_v13 = vmax.f32 %v1217_v10, 0.0 }
 0x265   : > { %v1442_v14 = vmax.f32 %v1219_v42, 0.0  ;;  %v1222_v15 = vpop.f32.mrb[28].mxu1 }
 0x266   : > { %v2275_v16 = vpack.c.bf16 %v1441_v13, %v1438_v12  ;;  %v1224_v45 = vpop.f32.mrb[29].mxu1  ;;  %v1223_v26 = vadd.f32 %v1222_v15, %v3029_v31 }
 0x267   : > { %v2273_v25 = vpack.c.bf16 %v1442_v14, %v1439_v51  ;;  %v1225_v24 = vadd.f32 %v1224_v45, %v3029_v31 }
 0x268   : > { %v1444_v30 = vmax.f32 %v1223_v26, 0.0 }
 0x269   : > { %v1228_v27 = vpop.f32.mrb[30].mxu1  ;;  %2274 = vmatprep.subr.bf16.mxu0 %v2273_v25  ;;  %v1445_v33 = vmax.f32 %v1225_v24, 0.0 }
 0x26a   : > { %v1229_v2 = vadd.f32 %v1228_v27, %v3027_v59  ;;  %v1230_v28 = vpop.f32.mrb[31].mxu1  ;;  %2276 = vmatpush1.bf16.msra.mxu0 %v2275_v16 }
 0x26b   : > { %v1231_v23 = vadd.f32 %v1230_v28, %v3027_v59 }
 0x26c   : > { %v1447_v32 = vmax.f32 %v1229_v2, 0.0 }
 0x26d   : > { %v1448_v34 = vmax.f32 %v1231_v23, 0.0  ;;  %v1234_v36 = vpop.f32.mrb[32].mxu1 }
 0x26e   : > { %v2279_v37 = vpack.c.bf16 %v1447_v32, %v1444_v30  ;;  %v1236_v38 = vpop.f32.mrb[33].mxu1  ;;  %v1235_v39 = vadd.f32 %v1234_v36, %v3038_v43  ;;  %v1625_v36 = vlaneseq }
 0x26f   : > { %v2277_v7 = vpack.c.bf16 %v1448_v34, %v1445_v33  ;;  %v1237_v31 = vadd.f32 %v1236_v38, %v3038_v43  ;;  %v2436_v33 = vmov 1966171168  }
 0x270   : > { %v1450_v44 = vmax.f32 %v1235_v39, 0.0  ;;  %v1623_v34 = vunpack.c.l.s4 %v2436_v33  ;;  %v1626_v38 = vshrl.u32 %v1625_v36, 7  ;;  %vm1647_vm3 = vcmp.lt.s32.totalorder %v1625_v36, 384 }
 0x271   : > { %v1240_v1 = vpop.f32.mrb[34].mxu1  ;;  %2278 = vmatprep.subr.bf16.mxu0 %v2277_v7  ;;  %v1451_v4 = vmax.f32 %v1237_v31, 0.0 }
 0x272   : > { %v1241_v41 = vadd.f32 %v1240_v1, %v3035_v40  ;;  %v1242_v55 = vpop.f32.mrb[35].mxu1  ;;  %2280 = vmatpush1.bf16.msra.mxu0 %v2279_v37  ;;  %v1624_v37 = vunpack.c.0.s8 %v1623_v34 }
 0x273   : > { %v1243_v59 = vadd.f32 %v1242_v55, %v3035_v40 }
 0x274   : > { %v1453_v58 = vmax.f32 %v1241_v41, 0.0  ;;  %v1627_v39 = vsub.s32 %v1624_v37, %v1626_v38 }
 0x275   : > { %v1454_v47 = vmax.f32 %v1243_v59, 0.0  ;;  %v1246_v20 = vpop.f32.mrb[36].mxu1 }
 0x276   : > { %v2283_v0 = vpack.c.bf16 %v1453_v58, %v1450_v44  ;;  %v1248_v48 = vpop.f32.mrb[37].mxu1  ;;  %v1247_v50 = vadd.f32 %v1246_v20, %v3045_v29 }
 0x277   : > { %v2281_v49 = vpack.c.bf16 %v1454_v47, %v1451_v4  ;;  %v1249_v43 = vadd.f32 %v1248_v48, %v3045_v29 }
 0x278   : > { %v1456_v56 = vmax.f32 %v1247_v50, 0.0 }
 0x279   : > { %v1252_v17 = vpop.f32.mrb[38].mxu1  ;;  %2282 = vmatprep.subr.bf16.mxu0 %v2281_v49  ;;  %v1457_v19 = vmax.f32 %v1249_v43, 0.0 }
 0x27a   : > { %v1253_v53 = vadd.f32 %v1252_v17, %v3043_v52  ;;  %v1254_v54 = vpop.f32.mrb[39].mxu1  ;;  %2284 = vmatpush1.bf16.msra.mxu0 %v2283_v0 }
 0x27b   : > { %v1255_v40 = vadd.f32 %v1254_v54, %v3043_v52 }
 0x27c   : > { %v1459_v57 = vmax.f32 %v1253_v53, 0.0 }
 0x27d   : > { %v1460_v60 = vmax.f32 %v1255_v40, 0.0  ;;  %v1258_v61 = vpop.f32.mrb[40].mxu1 }
 0x27e   : > { %v2287_v63 = vpack.c.bf16 %v1459_v57, %v1456_v56  ;;  %v1260_v22 = vpop.f32.mrb[41].mxu1  ;;  %v1259_v5 = vadd.f32 %v1258_v61, %v3055_v9 }
 0x27f   : > { %v2285_v3 = vpack.c.bf16 %v1460_v60, %v1457_v19  ;;  %v1261_v29 = vadd.f32 %v1260_v22, %v3055_v9 }
 0x280   : > { %v1462_v10 = vmax.f32 %v1259_v5, 0.0 }
 0x281   : > { %v1264_v62 = vpop.f32.mrb[42].mxu1  ;;  %2286 = vmatprep.subr.bf16.mxu0 %v2285_v3  ;;  %v1463_v42 = vmax.f32 %v1261_v29, 0.0 }
 0x282   : > { %v1265_v21 = vadd.f32 %v1264_v62, %v3052_v6  ;;  %v1266_v8 = vpop.f32.mrb[43].mxu1  ;;  %2288 = vmatpush1.bf16.msra.mxu0 %v2287_v63 }
 0x283   : > { %v1267_v52 = vadd.f32 %v1266_v8, %v3052_v6 }
 0x284   : > { %v1465_v11 = vmax.f32 %v1265_v21, 0.0 }
 0x285   : > { %v1466_v12 = vmax.f32 %v1267_v52, 0.0  ;;  %v1270_v13 = vpop.f32.mrb[44].mxu1 }
 0x286   : > { %v2291_v51 = vpack.c.bf16 %v1465_v11, %v1462_v10  ;;  %v1271_v14 = vadd.f32 %v1270_v13, %v3062_v35  ;;  %v1272_v15 = vpop.f32.mrb[45].mxu1 }
 0x287   : > { %v2289_v16 = vpack.c.bf16 %v1466_v12, %v1463_v42  ;;  %v1273_v9 = vadd.f32 %v1272_v15, %v3062_v35 }
 0x288   : > { %v1468_v24 = vmax.f32 %v1271_v14, 0.0 }
 0x289   : > { %v1276_v45 = vpop.f32.mrb[46].mxu1  ;;  %2290 = vmatprep.subr.bf16.mxu0 %v2289_v16  ;;  %v1469_v2 = vmax.f32 %v1273_v9, 0.0 }
 0x28a   : > { %v1277_v25 = vadd.f32 %v1276_v45, %v3060_v18  ;;  %v1278_v26 = vpop.f32.mrb[47].mxu1  ;;  %2292 = vmatpush1.bf16.msra.mxu0 %v2291_v51 }
 0x28b   : > { %v1279_v6 = vadd.f32 %v1278_v26, %v3060_v18  ;;  %v1476_v18 = vstv %s1475_s18 }
 0x28c   : > { %v1471_v27 = vmax.f32 %v1277_v25, 0.0 }
 0x28d   : > { %v1472_v28 = vmax.f32 %v1279_v6, 0.0 }
 0x28e   : > { %v2295_v23 = vpack.c.bf16 %v1471_v27, %v1468_v24 }
 0x28f   : > { %v2293_v30 = vpack.c.bf16 %v1472_v28, %v1469_v2 }
 0x291   : > { %2294 = vmatprep.subr.bf16.mxu0 %v2293_v30 }
 0x292   : > { %2296 = vmatpush1.bf16.msra.mxu0 %v2295_v23 }
 0x295   : > { %1542 = vmatmul.mubr.f32.vlgmr.msra.gmra.mrb[48].mxu0 %v3075_v46 }
 0x327   : > { %v1614_v35 = vpop.f32.mrb[48].mxu1 }
 0x328   : > { %v2104_v32 = vpop.f32.mrb[49].mxu1  ;;  %v1615_v31 = vadd.f32 %v1614_v35, %v1476_v18 }
 0x32a   : > { %v1635_v59 = vrot.slane %v1615_v31, %v1627_v39 }
 0x368   : > { %v1543_v7 = vpop.f32.mrb[48].mxu0 }
 0x369   : > { %v1544_v1 = vadd.f32 %v1543_v7, %v1476_v18  ;;  %v1545_v41 = vpop.f32.mrb[49].mxu0 }
 0x36a   : > { %v1546_v55 = vadd.f32 %v1545_v41, %v1476_v18 }
 0x36c   : > { %v1621_v46 = vcombine.low %v1544_v1, %v1546_v55 }
 0x36e   : > { %v1628_v44 = vrot.slane %v1621_v46, %v1627_v39 }
 0x370   : > { %v1636_v58 = vcombine.low %v1628_v44, %v1635_v59 }
 0x372   : > { %v1643_v4 = vrot.slane %v1636_v58, %v1627_v39 }
 0x374   : > { %1649 = vst.msk [vmem:[%s285_s21] sm:$0x7] %vm1647_vm3, %v1643_v4 }
 0x375   : > { %2381 = shalt.err (!%p2378_p3)
}
 0x376   : > { %s2382_s14 = scalar_lea.hbm %s3112_s24, 48  ;;  %s2386_s18 = scalar_lea.hbm %s3161_s7, 96 }
 0x377   : > { %p2383_p4 = scmp.ne.s32.totalorder %s3112_s24, %s2382_s14  ;;  %p2387_p9 = scmp.lt.u32.totalorder %s3112_s24, %s3161_s7 }
 0x378   : > { %p2388_p10 = scmp.lt.u32.totalorder %s2386_s18, %s2382_s14  ;;  %p2390_p12 = scmp.lt.u32.totalorder %s2382_s14, %s3112_s24 }
 0x379   : > { %p2384_p7 = pnand %p2383_p4, %p2516_p5 }
 0x37a   : > { %p2389_p11 = por %p2388_p10, %p2387_p9 }
 0x37b   : > { %p2385_p8 = pneg %p2384_p7 }
 0x37c   : > { %p2391_p13 = por %p2390_p12, %p2389_p11 }
 0x37e   : > { %p2392_p0 = pnand %p2391_p13, %p2385_p8 }
 0x380   : > { %2395 = shalt.err (!%p2392_p0)
}
 0x381   : > { %2322 = dma.vmem_to_hbm [thread:$0]  (%p2516_p5), %s3114_s22, 48, %s3112_s24, %s1651_s6  }
 0x382 PF: > { %p2328_p1 = scmp.ge.s32.totalorder %s2430_s29, 2  ;;  %s1677_s21 = sand.u32 1, %s2418_s26  }
 0x383   : > { %s1678_s25 = scalar_lea.sflag [#allocation4], %s1677_s21 }
 0x384   : > { %p2325_p2 = pnand %p2328_p1, %p2520_p6 }
 0x386   : > { %2413 = dma.done.wait (!%p2325_p2), %s1678_s25, 48  }
 0x387   : > { %2415 = vsyncadd (!%p2325_p2), %s1678_s25, 4294967248  ;;  %p18_p3 = scmp.ge.s32.totalorder %s2504_s8, 4   ;;  %s3166_s26 = smov %s2422_s27 }
 0x388   : > { %s3167_s27 = smov %s2426_s28  ;;  %s3168_s28 = smov %s2514_s11 }
 0x389   : > { %s3169_s29 = smov %s2504_s8  ;;  %20 = sbr.rel (!%p18_p3) target bundleno = 5 (0x5), region = 83 }
 0x390   :  { %1683 = vsyncpa [#allocation4], 1 }
 0x391   :  { %1685 = vsyncpa [#allocation4 + $0x1], 1 }

</bundles_post_ra>
